<compile_context>
chip_gen: v7x
topology: tpu7x:2x2x1
jax: 0.10.0
libtpu: 0.0.40
codegen_flags: <defaults>
</compile_context>

<pallas_src>
import functools

import jax
import jax.numpy as jnp
import numpy as np
from jax.experimental import pallas as pl
from jax.experimental.pallas import tpu as pltpu


# ----------------------------------------------------------------------------
# Fused kernel: (1x1 conv + BN + SiLU) -> (3x3 conv + BN + SiLU) -> SE gate
#               (+ optional residual), one batch element per grid step.
# ----------------------------------------------------------------------------
def se_bottleneck_kernel(x_ref, w1_ref, b1_ref, w2_ref, b2_ref,
                         wse1_ref, wse2_ref, o_ref,
                         xp_scr, col_scr, *, H, W, add):
    # x_ref:    (1, H*W, C1)   input activations
    # w1_ref:   (C1, C_)       1x1 conv weight, BN scale pre-folded
    # b1_ref:   (1, C_)        folded BN bias (f32)
    # w2_ref:   (9*C_, C2)     3x3 conv weight (HWIO flattened), BN scale folded
    # b2_ref:   (1, C2)        folded BN bias (f32)
    # wse1_ref: (C2, CRP)      SE fc1 weight, reduce dim zero-padded to CRP
    # wse2_ref: (CRP, C2)      SE fc2 weight, zero-padded rows
    # o_ref:    (1, H*W, C2)
    # xp_scr:   VMEM (H+2, W+2, C_)  f32, zero-padded cv1 output
    # col_scr:  VMEM (H, W, 9*C_)    f32, im2col buffer
    C_ = w1_ref.shape[1]
    mm_dtype = w2_ref.dtype          # matmul operand dtype (f32 or bf16)

    x = x_ref[0]                     # (H*W, C1)

    # --- cv1: 1x1 conv as a matmul, folded-BN bias, SiLU (f32 epilogue) -----
    y1 = jnp.dot(x, w1_ref[...], preferred_element_type=jnp.float32)
    y1 = y1 + b1_ref[...]
    y1 = y1 * jax.nn.sigmoid(y1)                       # SiLU, (H*W, C_) f32

    # --- in-kernel zero padding (pad=1) of the cv1 output -------------------
    xp_scr[...] = jnp.zeros_like(xp_scr)               # cheap VMEM memset
    xp_scr[pl.ds(1, H), pl.ds(1, W), :] = y1.reshape(H, W, C_)

    # --- cv2: 3x3 conv as ONE im2col matmul (K = 9*C_) ----------------------
    for k in range(9):
        ki, kj = divmod(k, 3)
        col_scr[:, :, pl.ds(k * C_, C_)] = xp_scr[pl.ds(ki, H), pl.ds(kj, W), :]
    im2col = col_scr[...].reshape(H * W, 9 * C_).astype(mm_dtype)
    y2 = jnp.dot(im2col, w2_ref[...], preferred_element_type=jnp.float32)
    y2 = y2 + b2_ref[...]
    y2 = y2 * jax.nn.sigmoid(y2)                       # SiLU, (H*W, C2) f32

    # --- SE: global avg pool -> FC -> ReLU -> FC -> sigmoid -> scale --------
    # Block == one full batch element by construction, so this mean is the
    # true global average pool (never a partial mean).
    pooled = jnp.mean(y2, axis=0, keepdims=True)       # (1, C2) f32
    h = jnp.maximum(
        jnp.dot(pooled, wse1_ref[...], preferred_element_type=jnp.float32),
        0.0)                                           # ReLU, (1, CRP)
    gate = jax.nn.sigmoid(
        jnp.dot(h, wse2_ref[...], preferred_element_type=jnp.float32))  # (1, C2)

    out = y2 * gate
    if add:                                            # residual (c1 == c2)
        out = out + x.astype(jnp.float32)
    o_ref[0] = out.astype(o_ref.dtype)


# ----------------------------------------------------------------------------
# Wrapper
# ----------------------------------------------------------------------------
def fold_bn(gamma, beta, mean, var, eps=1e-5):
    scale = gamma / jnp.sqrt(var + eps)
    bias = beta - mean * scale
    return scale, bias


def prepare_fused_params(p, compute_dtype=jnp.float32):
    """Fold BN scale into conv weights, flatten the 3x3 weight for im2col,
    zero-pad the SE reduce dim, and cast matmul weights to compute_dtype."""
    c1, c_ = p["w_cv1"].shape
    c2 = p["w_cv2"].shape[-1]
    cr = p["w_se1"].shape[-1]
    crp = max(8, ((cr + 7) // 8) * 8)

    w1 = (p["w_cv1"] * p["cv1_scale"][None, :]).astype(compute_dtype)
    w2 = (p["w_cv2"] * p["cv2_scale"][None, None, None, :]
          ).reshape(9 * c_, c2).astype(compute_dtype)
    b1 = p["cv1_bias"].reshape(1, c_).astype(jnp.float32)
    b2 = p["cv2_bias"].reshape(1, c2).astype(jnp.float32)
    wse1 = jnp.zeros((c2, crp), jnp.float32).at[:, :cr].set(p["w_se1"])
    wse2 = jnp.zeros((crp, c2), jnp.float32).at[:cr, :].set(p["w_se2"])
    return dict(w1=w1, b1=b1, w2=w2, b2=b2, wse1=wse1, wse2=wse2)


def se_bottleneck_fused(x_nhwc, fp, add):
    B, H, W, C1 = x_nhwc.shape
    C_ = fp["w1"].shape[1]
    C2 = fp["w2"].shape[1]
    CRP = fp["wse1"].shape[1]
    compute_dtype = fp["w1"].dtype

    xm = x_nhwc.astype(compute_dtype).reshape(B, H * W, C1)
    kernel = functools.partial(se_bottleneck_kernel, H=H, W=W, add=add)

    out = pl.pallas_call(
        kernel,
        out_shape=jax.ShapeDtypeStruct((B, H * W, C2), compute_dtype),
        grid=(B,),
        in_specs=[
            pl.BlockSpec((1, H * W, C1), lambda b: (b, 0, 0)),   # x
            pl.BlockSpec((C1, C_), lambda b: (0, 0)),            # w1 (folded)
            pl.BlockSpec((1, C_), lambda b: (0, 0)),             # b1
            pl.BlockSpec((9 * C_, C2), lambda b: (0, 0)),        # w2 (folded)
            pl.BlockSpec((1, C2), lambda b: (0, 0)),             # b2
            pl.BlockSpec((C2, CRP), lambda b: (0, 0)),           # SE fc1
            pl.BlockSpec((CRP, C2), lambda b: (0, 0)),           # SE fc2
        ],
        out_specs=pl.BlockSpec((1, H * W, C2), lambda b: (b, 0, 0)),
        scratch_shapes=[
            pltpu.VMEM((H + 2, W + 2, C_), jnp.float32),   # padded cv1 output
            pltpu.VMEM((H, W, 9 * C_), jnp.float32),       # im2col buffer
        ],
        compiler_params=pltpu.CompilerParams(
            dimension_semantics=("parallel",),             # shard batch on v7x
        ),
    )(xm, fp["w1"], fp["b1"], fp["w2"], fp["b2"], fp["wse1"], fp["wse2"])
    return out.reshape(B, H, W, C2)


# ----------------------------------------------------------------------------
# Pure-JAX reference (unfused parameterization) for correctness checks
# ----------------------------------------------------------------------------
def reference_forward(x, p, add):
    def silu(v):
        return v * jax.nn.sigmoid(v)

    y = jnp.einsum("bhwc,cd->bhwd", x, p["w_cv1"])
    y = silu(y * p["cv1_scale"] + p["cv1_bias"])
    y = jax.lax.conv_general_dilated(
        y, p["w_cv2"], window_strides=(1, 1), padding="SAME",
        dimension_numbers=("NHWC", "HWIO", "NHWC"))
    y = silu(y * p["cv2_scale"] + p["cv2_bias"])
    pooled = jnp.mean(y, axis=(1, 2))                      # (B, C2)
    h = jnp.maximum(pooled @ p["w_se1"], 0.0)
    s = jax.nn.sigmoid(h @ p["w_se2"])                     # (B, C2)
    out = y * s[:, None, None, :]
    if add:
        out = out + x
    return out


if __name__ == "__main__":
    # SE_Bottleneck(c1=32, c2=32, shortcut=True, g=1, e=0.5):
    #   c_ = 16, SE hidden = c2 // 16 = 2, add = True (c1 == c2)
    c1 = c2 = 32
    c_ = int(c2 * 0.5)
    cr = c2 // 16
    add = True
    B, H, W = 2, 8, 8

    key = jax.random.PRNGKey(0)
    keys = jax.random.split(key, 12)

    w_cv1 = jax.random.normal(keys[0], (c1, c_), jnp.float32) * 0.1
    w_cv2 = jax.random.normal(keys[1], (3, 3, c_, c2), jnp.float32) * 0.1
    w_se1 = jax.random.normal(keys[2], (c2, cr), jnp.float32) * 0.1
    w_se2 = jax.random.normal(keys[3], (cr, c2), jnp.float32) * 0.1

    g1 = 1.0 + 0.1 * jax.random.normal(keys[4], (c_,), jnp.float32)
    b1 = 0.1 * jax.random.normal(keys[5], (c_,), jnp.float32)
    m1 = 0.1 * jax.random.normal(keys[6], (c_,), jnp.float32)
    v1 = 0.5 + jnp.abs(jax.random.normal(keys[7], (c_,), jnp.float32)) * 0.1
    g2 = 1.0 + 0.1 * jax.random.normal(keys[8], (c2,), jnp.float32)
    b2 = 0.1 * jax.random.normal(keys[9], (c2,), jnp.float32)
    m2 = 0.1 * jax.random.normal(keys[10], (c2,), jnp.float32)
    v2 = 0.5 + jnp.abs(jax.random.normal(keys[11], (c2,), jnp.float32)) * 0.1

    cv1_scale, cv1_bias = fold_bn(g1, b1, m1, v1)
    cv2_scale, cv2_bias = fold_bn(g2, b2, m2, v2)

    params = dict(w_cv1=w_cv1, w_cv2=w_cv2, w_se1=w_se1, w_se2=w_se2,
                  cv1_scale=cv1_scale, cv1_bias=cv1_bias,
                  cv2_scale=cv2_scale, cv2_bias=cv2_bias)

    # Input in PyTorch NCHW convention, transposed to NHWC for the kernel.
    x_nchw = jax.random.normal(jax.random.PRNGKey(42), (B, c1, H, W),
                               jnp.float32)
    x_nhwc = jnp.transpose(x_nchw, (0, 2, 3, 1))

    ref = reference_forward(x_nhwc, params, add)

    # f32 path (tight correctness check).
    fp_f32 = prepare_fused_params(params, compute_dtype=jnp.float32)
    out_f32 = jax.block_until_ready(se_bottleneck_fused(x_nhwc, fp_f32, add))
    np.testing.assert_allclose(np.asarray(out_f32), np.asarray(ref),
                               rtol=1e-4, atol=1e-5)

    # bf16 matmul-operand path (v6e/v7x MXU), f32 accumulation + epilogue.
    fp_bf16 = prepare_fused_params(params, compute_dtype=jnp.bfloat16)
    out_bf16 = jax.block_until_ready(se_bottleneck_fused(x_nhwc, fp_bf16, add))
    np.testing.assert_allclose(np.asarray(out_bf16.astype(jnp.float32)),
                               np.asarray(ref), rtol=1e-1, atol=1e-1)

    # Back to NCHW, matching the PyTorch module's output layout.
    out_nchw = jnp.transpose(out_f32, (0, 3, 1, 2))
    assert out_nchw.shape == (B, c2, H, W)

    print("KERNEL_OK")
</pallas_src>

<mosaic_0001>
module attributes {stable_mosaic.version = 11 : i64} {
  func.func @se_bottleneck_kernel(%arg0: i32, %arg1: memref<1x64x32xf32, #tpu.memory_space<vmem>>, %arg2: memref<32x16xf32, #tpu.memory_space<vmem>>, %arg3: memref<1x16xf32, #tpu.memory_space<vmem>>, %arg4: memref<144x32xf32, #tpu.memory_space<vmem>>, %arg5: memref<1x32xf32, #tpu.memory_space<vmem>>, %arg6: memref<32x8xf32, #tpu.memory_space<vmem>>, %arg7: memref<8x32xf32, #tpu.memory_space<vmem>>, %arg8: memref<1x64x32xf32, #tpu.memory_space<vmem>>, %arg9: memref<10x10x16xf32, #tpu.memory_space<vmem>>, %arg10: memref<8x8x144xf32, #tpu.memory_space<vmem>>) attributes {dimension_semantics = [#tpu.dimension_semantics<parallel>], iteration_bounds = array<i64: 2>, scalar_prefetch = 0 : i64, scratch_operands = 2 : i64, tpu.core_type = #tpu.core_type<tc>, window_params = [{transform_indices = @transform_0, window_bounds = array<i64: 1, 64, 32>}, {pipeline_mode = #tpu.pipeline_mode<synchronous>, transform_indices = @transform_1, window_bounds = array<i64: 32, 16>}, {pipeline_mode = #tpu.pipeline_mode<synchronous>, transform_indices = @transform_2, window_bounds = array<i64: 1, 16>}, {pipeline_mode = #tpu.pipeline_mode<synchronous>, transform_indices = @transform_3, window_bounds = array<i64: 144, 32>}, {pipeline_mode = #tpu.pipeline_mode<synchronous>, transform_indices = @transform_4, window_bounds = array<i64: 1, 32>}, {pipeline_mode = #tpu.pipeline_mode<synchronous>, transform_indices = @transform_5, window_bounds = array<i64: 32, 8>}, {pipeline_mode = #tpu.pipeline_mode<synchronous>, transform_indices = @transform_6, window_bounds = array<i64: 8, 32>}, {transform_indices = @transform_7, window_bounds = array<i64: 1, 64, 32>}]} {
    %c0 = arith.constant 0 : index
    %c0_0 = arith.constant 0 : index
    %c0_1 = arith.constant 0 : index
    %0 = vector.load %arg1[%c0, %c0_0, %c0_1] : memref<1x64x32xf32, #tpu.memory_space<vmem>>, vector<1x64x32xf32>
    %1 = vector.shape_cast %0 : vector<1x64x32xf32> to vector<64x32xf32>
    %c0_2 = arith.constant 0 : index
    %c0_3 = arith.constant 0 : index
    %2 = vector.load %arg2[%c0_2, %c0_3] : memref<32x16xf32, #tpu.memory_space<vmem>>, vector<32x16xf32>
    %cst = arith.constant dense<0.000000e+00> : vector<64x16xf32>
    %3 = tpu.matmul %1, %2, %cst {dimension_numbers = #tpu.dot_dimension_numbers<[1], [0], [0], [1], [0, 0, 1, 1], [], []>} : vector<64x32xf32>, vector<32x16xf32>, vector<64x16xf32> -> vector<64x16xf32>
    %c0_4 = arith.constant 0 : index
    %c0_5 = arith.constant 0 : index
    %4 = vector.load %arg3[%c0_4, %c0_5] : memref<1x16xf32, #tpu.memory_space<vmem>>, vector<1x16xf32>
    %5 = vector.broadcast %4 : vector<1x16xf32> to vector<64x16xf32>
    %6 = arith.addf %3, %5 : vector<64x16xf32>
    %7 = arith.negf %6 : vector<64x16xf32>
    %8 = math.exp %7 : vector<64x16xf32>
    %cst_6 = arith.constant 1.000000e+00 : f32
    %9 = vector.broadcast %cst_6 : f32 to vector<64x16xf32>
    %10 = arith.addf %9, %8 : vector<64x16xf32>
    %11 = arith.divf %9, %10 : vector<64x16xf32>
    %12 = arith.mulf %6, %11 : vector<64x16xf32>
    %cst_7 = arith.constant 0.000000e+00 : f32
    %13 = vector.broadcast %cst_7 : f32 to vector<10x10x16xf32>
    %c0_8 = arith.constant 0 : index
    %c0_9 = arith.constant 0 : index
    %c0_10 = arith.constant 0 : index
    %14 = vector.load %arg9[%c0_8, %c0_9, %c0_10] : memref<10x10x16xf32, #tpu.memory_space<vmem>>, vector<10x10x16xf32>
    tpu.vector_store %arg9[%c0_8, %c0_9, %c0_10], %13 {strides = array<i32>} : memref<10x10x16xf32, #tpu.memory_space<vmem>>, vector<10x10x16xf32>,
    %15 = vector.shape_cast %12 : vector<64x16xf32> to vector<8x8x16xf32>
    %c1 = arith.constant 1 : index
    %c1_11 = arith.constant 1 : index
    %c0_12 = arith.constant 0 : index
    %16 = vector.load %arg9[%c1, %c1_11, %c0_12] : memref<10x10x16xf32, #tpu.memory_space<vmem>>, vector<8x8x16xf32>
    tpu.vector_store %arg9[%c1, %c1_11, %c0_12], %15 {strides = array<i32>} : memref<10x10x16xf32, #tpu.memory_space<vmem>>, vector<8x8x16xf32>,
    %c0_13 = arith.constant 0 : index
    %c0_14 = arith.constant 0 : index
    %c0_15 = arith.constant 0 : index
    %17 = vector.load %arg9[%c0_13, %c0_14, %c0_15] : memref<10x10x16xf32, #tpu.memory_space<vmem>>, vector<8x8x16xf32>
    %c0_16 = arith.constant 0 : index
    %c0_17 = arith.constant 0 : index
    %c0_18 = arith.constant 0 : index
    %18 = vector.load %arg10[%c0_16, %c0_17, %c0_18] : memref<8x8x144xf32, #tpu.memory_space<vmem>>, vector<8x8x16xf32>
    tpu.vector_store %arg10[%c0_16, %c0_17, %c0_18], %17 {strides = array<i32>} : memref<8x8x144xf32, #tpu.memory_space<vmem>>, vector<8x8x16xf32>,
    %c0_19 = arith.constant 0 : index
    %c1_20 = arith.constant 1 : index
    %c0_21 = arith.constant 0 : index
    %19 = vector.load %arg9[%c0_19, %c1_20, %c0_21] : memref<10x10x16xf32, #tpu.memory_space<vmem>>, vector<8x8x16xf32>
    %c0_22 = arith.constant 0 : index
    %c0_23 = arith.constant 0 : index
    %c16 = arith.constant 16 : index
    %20 = vector.load %arg10[%c0_22, %c0_23, %c16] : memref<8x8x144xf32, #tpu.memory_space<vmem>>, vector<8x8x16xf32>
    tpu.vector_store %arg10[%c0_22, %c0_23, %c16], %19 {strides = array<i32>} : memref<8x8x144xf32, #tpu.memory_space<vmem>>, vector<8x8x16xf32>,
    %c0_24 = arith.constant 0 : index
    %c2 = arith.constant 2 : index
    %c0_25 = arith.constant 0 : index
    %21 = vector.load %arg9[%c0_24, %c2, %c0_25] : memref<10x10x16xf32, #tpu.memory_space<vmem>>, vector<8x8x16xf32>
    %c0_26 = arith.constant 0 : index
    %c0_27 = arith.constant 0 : index
    %c32 = arith.constant 32 : index
    %22 = vector.load %arg10[%c0_26, %c0_27, %c32] : memref<8x8x144xf32, #tpu.memory_space<vmem>>, vector<8x8x16xf32>
    tpu.vector_store %arg10[%c0_26, %c0_27, %c32], %21 {strides = array<i32>} : memref<8x8x144xf32, #tpu.memory_space<vmem>>, vector<8x8x16xf32>,
    %c1_28 = arith.constant 1 : index
    %c0_29 = arith.constant 0 : index
    %c0_30 = arith.constant 0 : index
    %23 = vector.load %arg9[%c1_28, %c0_29, %c0_30] : memref<10x10x16xf32, #tpu.memory_space<vmem>>, vector<8x8x16xf32>
    %c0_31 = arith.constant 0 : index
    %c0_32 = arith.constant 0 : index
    %c48 = arith.constant 48 : index
    %24 = vector.load %arg10[%c0_31, %c0_32, %c48] : memref<8x8x144xf32, #tpu.memory_space<vmem>>, vector<8x8x16xf32>
    tpu.vector_store %arg10[%c0_31, %c0_32, %c48], %23 {strides = array<i32>} : memref<8x8x144xf32, #tpu.memory_space<vmem>>, vector<8x8x16xf32>,
    %c1_33 = arith.constant 1 : index
    %c1_34 = arith.constant 1 : index
    %c0_35 = arith.constant 0 : index
    %25 = vector.load %arg9[%c1_33, %c1_34, %c0_35] : memref<10x10x16xf32, #tpu.memory_space<vmem>>, vector<8x8x16xf32>
    %c0_36 = arith.constant 0 : index
    %c0_37 = arith.constant 0 : index
    %c64 = arith.constant 64 : index
    %26 = vector.load %arg10[%c0_36, %c0_37, %c64] : memref<8x8x144xf32, #tpu.memory_space<vmem>>, vector<8x8x16xf32>
    tpu.vector_store %arg10[%c0_36, %c0_37, %c64], %25 {strides = array<i32>} : memref<8x8x144xf32, #tpu.memory_space<vmem>>, vector<8x8x16xf32>,
    %c1_38 = arith.constant 1 : index
    %c2_39 = arith.constant 2 : index
    %c0_40 = arith.constant 0 : index
    %27 = vector.load %arg9[%c1_38, %c2_39, %c0_40] : memref<10x10x16xf32, #tpu.memory_space<vmem>>, vector<8x8x16xf32>
    %c0_41 = arith.constant 0 : index
    %c0_42 = arith.constant 0 : index
    %c80 = arith.constant 80 : index
    %28 = vector.load %arg10[%c0_41, %c0_42, %c80] : memref<8x8x144xf32, #tpu.memory_space<vmem>>, vector<8x8x16xf32>
    tpu.vector_store %arg10[%c0_41, %c0_42, %c80], %27 {strides = array<i32>} : memref<8x8x144xf32, #tpu.memory_space<vmem>>, vector<8x8x16xf32>,
    %c2_43 = arith.constant 2 : index
    %c0_44 = arith.constant 0 : index
    %c0_45 = arith.constant 0 : index
    %29 = vector.load %arg9[%c2_43, %c0_44, %c0_45] : memref<10x10x16xf32, #tpu.memory_space<vmem>>, vector<8x8x16xf32>
    %c0_46 = arith.constant 0 : index
    %c0_47 = arith.constant 0 : index
    %c96 = arith.constant 96 : index
    %30 = vector.load %arg10[%c0_46, %c0_47, %c96] : memref<8x8x144xf32, #tpu.memory_space<vmem>>, vector<8x8x16xf32>
    tpu.vector_store %arg10[%c0_46, %c0_47, %c96], %29 {strides = array<i32>} : memref<8x8x144xf32, #tpu.memory_space<vmem>>, vector<8x8x16xf32>,
    %c2_48 = arith.constant 2 : index
    %c1_49 = arith.constant 1 : index
    %c0_50 = arith.constant 0 : index
    %31 = vector.load %arg9[%c2_48, %c1_49, %c0_50] : memref<10x10x16xf32, #tpu.memory_space<vmem>>, vector<8x8x16xf32>
    %c0_51 = arith.constant 0 : index
    %c0_52 = arith.constant 0 : index
    %c112 = arith.constant 112 : index
    %32 = vector.load %arg10[%c0_51, %c0_52, %c112] : memref<8x8x144xf32, #tpu.memory_space<vmem>>, vector<8x8x16xf32>
    tpu.vector_store %arg10[%c0_51, %c0_52, %c112], %31 {strides = array<i32>} : memref<8x8x144xf32, #tpu.memory_space<vmem>>, vector<8x8x16xf32>,
    %c2_53 = arith.constant 2 : index
    %c2_54 = arith.constant 2 : index
    %c0_55 = arith.constant 0 : index
    %33 = vector.load %arg9[%c2_53, %c2_54, %c0_55] : memref<10x10x16xf32, #tpu.memory_space<vmem>>, vector<8x8x16xf32>
    %c0_56 = arith.constant 0 : index
    %c0_57 = arith.constant 0 : index
    %c128 = arith.constant 128 : index
    %34 = vector.load %arg10[%c0_56, %c0_57, %c128] : memref<8x8x144xf32, #tpu.memory_space<vmem>>, vector<8x8x16xf32>
    tpu.vector_store %arg10[%c0_56, %c0_57, %c128], %33 {strides = array<i32>} : memref<8x8x144xf32, #tpu.memory_space<vmem>>, vector<8x8x16xf32>,
    %c0_58 = arith.constant 0 : index
    %c0_59 = arith.constant 0 : index
    %c0_60 = arith.constant 0 : index
    %35 = vector.load %arg10[%c0_58, %c0_59, %c0_60] : memref<8x8x144xf32, #tpu.memory_space<vmem>>, vector<8x8x144xf32>
    %36 = vector.shape_cast %35 : vector<8x8x144xf32> to vector<64x144xf32>
    %c0_61 = arith.constant 0 : index
    %c0_62 = arith.constant 0 : index
    %37 = vector.load %arg4[%c0_61, %c0_62] : memref<144x32xf32, #tpu.memory_space<vmem>>, vector<144x32xf32>
    %cst_63 = arith.constant dense<0.000000e+00> : vector<64x32xf32>
    %38 = tpu.matmul %36, %37, %cst_63 {dimension_numbers = #tpu.dot_dimension_numbers<[1], [0], [0], [1], [0, 0, 1, 1], [], []>} : vector<64x144xf32>, vector<144x32xf32>, vector<64x32xf32> -> vector<64x32xf32>
    %c0_64 = arith.constant 0 : index
    %c0_65 = arith.constant 0 : index
    %39 = vector.load %arg5[%c0_64, %c0_65] : memref<1x32xf32, #tpu.memory_space<vmem>>, vector<1x32xf32>
    %40 = vector.broadcast %39 : vector<1x32xf32> to vector<64x32xf32>
    %41 = arith.addf %38, %40 : vector<64x32xf32>
    %42 = arith.negf %41 : vector<64x32xf32>
    %43 = math.exp %42 : vector<64x32xf32>
    %cst_66 = arith.constant 1.000000e+00 : f32
    %44 = vector.broadcast %cst_66 : f32 to vector<64x32xf32>
    %45 = arith.addf %44, %43 : vector<64x32xf32>
    %46 = arith.divf %44, %45 : vector<64x32xf32>
    %47 = arith.mulf %41, %46 : vector<64x32xf32>
    %cst_67 = arith.constant dense<0.000000e+00> : vector<32xf32>
    %48 = vector.multi_reduction <add>, %47, %cst_67 [0] : vector<64x32xf32> to vector<32xf32>
    %49 = vector.shape_cast %48 : vector<32xf32> to vector<1x32xf32>
    %cst_68 = arith.constant 6.400000e+01 : f32
    %50 = vector.broadcast %cst_68 : f32 to vector<1x32xf32>
    %51 = arith.divf %49, %50 : vector<1x32xf32>
    %c0_69 = arith.constant 0 : index
    %c0_70 = arith.constant 0 : index
    %52 = vector.load %arg6[%c0_69, %c0_70] : memref<32x8xf32, #tpu.memory_space<vmem>>, vector<32x8xf32>
    %cst_71 = arith.constant dense<0.000000e+00> : vector<1x8xf32>
    %53 = tpu.matmul %51, %52, %cst_71 {dimension_numbers = #tpu.dot_dimension_numbers<[1], [0], [0], [1], [0, 0, 1, 1], [], []>} : vector<1x32xf32>, vector<32x8xf32>, vector<1x8xf32> -> vector<1x8xf32>
    %cst_72 = arith.constant 0.000000e+00 : f32
    %54 = vector.broadcast %cst_72 : f32 to vector<1x8xf32>
    %55 = arith.maximumf %53, %54 : vector<1x8xf32>
    %c0_73 = arith.constant 0 : index
    %c0_74 = arith.constant 0 : index
    %56 = vector.load %arg7[%c0_73, %c0_74] : memref<8x32xf32, #tpu.memory_space<vmem>>, vector<8x32xf32>
    %cst_75 = arith.constant dense<0.000000e+00> : vector<1x32xf32>
    %57 = tpu.matmul %55, %56, %cst_75 {dimension_numbers = #tpu.dot_dimension_numbers<[1], [0], [0], [1], [0, 0, 1, 1], [], []>} : vector<1x8xf32>, vector<8x32xf32>, vector<1x32xf32> -> vector<1x32xf32>
    %58 = arith.negf %57 : vector<1x32xf32>
    %59 = math.exp %58 : vector<1x32xf32>
    %cst_76 = arith.constant 1.000000e+00 : f32
    %60 = vector.broadcast %cst_76 : f32 to vector<1x32xf32>
    %61 = arith.addf %60, %59 : vector<1x32xf32>
    %62 = arith.divf %60, %61 : vector<1x32xf32>
    %63 = vector.broadcast %62 : vector<1x32xf32> to vector<64x32xf32>
    %64 = arith.mulf %47, %63 : vector<64x32xf32>
    %65 = arith.addf %64, %1 : vector<64x32xf32>
    %c0_77 = arith.constant 0 : index
    %c0_78 = arith.constant 0 : index
    %c0_79 = arith.constant 0 : index
    %66 = vector.load %arg8[%c0_77, %c0_78, %c0_79] : memref<1x64x32xf32, #tpu.memory_space<vmem>>, vector<1x64x32xf32>
    %67 = vector.shape_cast %66 : vector<1x64x32xf32> to vector<64x32xf32>
    %68 = vector.shape_cast %65 : vector<64x32xf32> to vector<1x64x32xf32>
    tpu.vector_store %arg8[%c0_77, %c0_78, %c0_79], %68 {strides = array<i32>} : memref<1x64x32xf32, #tpu.memory_space<vmem>>, vector<1x64x32xf32>,
    return
  }
  func.func @transform_0(%arg0: i32) -> (i32, i32, i32) {
    %c0_i32 = arith.constant 0 : i32
    %c0_i32_0 = arith.constant 0 : i32
    %c0_i32_1 = arith.constant 0 : i32
    return %arg0, %c0_i32, %c0_i32_0 : i32, i32, i32
  }
  func.func @transform_1(%arg0: i32) -> (i32, i32) {
    %c0_i32 = arith.constant 0 : i32
    %c0_i32_0 = arith.constant 0 : i32
    %c0_i32_1 = arith.constant 0 : i32
    return %c0_i32, %c0_i32_0 : i32, i32
  }
  func.func @transform_2(%arg0: i32) -> (i32, i32) {
    %c0_i32 = arith.constant 0 : i32
    %c0_i32_0 = arith.constant 0 : i32
    %c0_i32_1 = arith.constant 0 : i32
    return %c0_i32, %c0_i32_0 : i32, i32
  }
  func.func @transform_3(%arg0: i32) -> (i32, i32) {
    %c0_i32 = arith.constant 0 : i32
    %c0_i32_0 = arith.constant 0 : i32
    %c0_i32_1 = arith.constant 0 : i32
    return %c0_i32, %c0_i32_0 : i32, i32
  }
  func.func @transform_4(%arg0: i32) -> (i32, i32) {
    %c0_i32 = arith.constant 0 : i32
    %c0_i32_0 = arith.constant 0 : i32
    %c0_i32_1 = arith.constant 0 : i32
    return %c0_i32, %c0_i32_0 : i32, i32
  }
  func.func @transform_5(%arg0: i32) -> (i32, i32) {
    %c0_i32 = arith.constant 0 : i32
    %c0_i32_0 = arith.constant 0 : i32
    %c0_i32_1 = arith.constant 0 : i32
    return %c0_i32, %c0_i32_0 : i32, i32
  }
  func.func @transform_6(%arg0: i32) -> (i32, i32) {
    %c0_i32 = arith.constant 0 : i32
    %c0_i32_0 = arith.constant 0 : i32
    %c0_i32_1 = arith.constant 0 : i32
    return %c0_i32, %c0_i32_0 : i32, i32
  }
  func.func @transform_7(%arg0: i32) -> (i32, i32, i32) {
    %c0_i32 = arith.constant 0 : i32
    %c0_i32_0 = arith.constant 0 : i32
    %c0_i32_1 = arith.constant 0 : i32
    return %arg0, %c0_i32, %c0_i32_0 : i32, i32, i32
  }
}

</mosaic_0001>

<bundles_post_ra>
// kernel: tpu_custom_call.1
= control target key start
LH: loop header
LB: loop body
LE: loop exit
PB: predicated region body
PF: predicated region fallthrough
CT: control target
= control target key end

     0   :  { %s1698_s24 = smov 0   ;;  %s2142_s0 = inlined_call_operand.vmem [shape: f32[2,64,32], index: 0, kind: input, shape index: {}]   ;;  %s2143_s1 = inlined_call_operand.vmem [shape: f32[32,16], index: 1, kind: input, shape index: {}]   ;;  %s2144_s2 = inlined_call_operand.vmem [shape: f32[1,16], index: 2, kind: input, shape index: {}]   ;;  %s2145_s3 = inlined_call_operand.vmem [shape: f32[144,32], index: 3, kind: input, shape index: {}]   ;;  %s2146_s4 = inlined_call_operand.vmem [shape: f32[1,32], index: 4, kind: input, shape index: {}]   ;;  %s2147_s5 = inlined_call_operand.vmem [shape: f32[32,8], index: 5, kind: input, shape index: {}]   ;;  %s2148_s6 = inlined_call_operand.vmem [shape: f32[8,32], index: 6, kind: input, shape index: {}]   ;;  %s2149_s7 = inlined_call_operand.vmem [shape: f32[2,64,32], index: 7, kind: output, shape index: {}]  }
   0x1 LB: > { %s1382_s25 = sadd.s32 4294967295, %s1646_s24   ;;  %p1386_p0 = scmp.ge.s32.totalorder %s1646_s24, 1  ;;  %s1646_s24 = sphi %s1698_s24, %s17_s24  }
   0x2   : > { %p237_p1 = scmp.lt.s32.totalorder %s1646_s24, 3 }
   0x4   : > { %p238_p2 = pnand %p1386_p0, %p237_p1 }
   0x5   : > { %v287_v0 = vld [vmem:[%s2143_s1] sm:$0xff] (!%p238_p2)  ;;  %v288_v1 = vld [vmem:[%s2143_s1 + $0x8] sm:$0xff] (!%p238_p2)  ;;  %v289_v2 = vld [vmem:[%s2143_s1 + $0x10] sm:$0xff] (!%p238_p2)  ;;  %p269_p3 = scmp.lt.s32.totalorder (!%p238_p2), %s1382_s25, 1  ;;  %vm298_vm0 = vcmask (!%p238_p2), 261120   ;;  %vm484_vm1 = vcmask (!%p238_p2), 130048  }
   0x6   : > { %241 = sbr.rel (%p238_p2) target bundleno = 1218 (0x4c2), region = 48  ;;  %v1487_v3 = vpack.c.bf16 (!%p238_p2), %v288_v1, %v287_v0  ;;  %v290_v4 = vld [vmem:[%s2143_s1 + $0x18] sm:$0xff] (!%p238_p2)  ;;  %vm486_vm2 = vcmask (!%p238_p2), 123904   ;;  %v1648_v14 = vmov (!%p238_p2), 0.0   ;;  %s1649_s15 = smov (!%p238_p2), 32   ;;  %v907_v47 = vld [vmem:[%s2145_s3] sm:$0xff] (!%p238_p2) }
   0x7   : > { %v1491_v5 = vpack.c.bf16 (!%p238_p2), %v290_v4, %v289_v2  ;;  %490 = vst.msk [vmem:[#allocation2 + $0x20] sm:$0xff] (!%p238_p2), %vm484_vm1, %v1648_v14  ;;  %485 = vst.msk [vmem:[#allocation2] sm:$0xff] (!%p238_p2), %vm484_vm1, %v1648_v14  ;;  %s1650_s16 = smov (!%p238_p2), 16   ;;  %v1391_v17 = vld [vmem:[%s2144_s2] ss:$0 sm:$0xff] (!%p238_p2)  ;;  %v908_v48 = vld [vmem:[%s2145_s3 + $0x8] sm:$0xff] (!%p238_p2) }
   0x8   : > { %1488 = vmatprep.subr.bf16.mxu0 (!%p238_p2), %v1487_v3  ;;  %491 = vst.msk [vmem:[#allocation2 + $0x28] sm:$0x3] (!%p238_p2), %vm486_vm2, %v1648_v14  ;;  %487 = vst.msk [vmem:[#allocation2 + $0x8] sm:$0x3] (!%p238_p2), %vm486_vm2, %v1648_v14  ;;  %v1651_v49 = vmov (!%p238_p2), 0.0|0.0   ;;  %v1496_v50 = vpack.c.bf16 (!%p238_p2), %v908_v48, %v907_v47  ;;  %vm571_vm3 = vcmask (!%p238_p2), 261248  }
   0x9   : > { %1490 = vmatpush3.bf16.msra.mxu0 (!%p238_p2), %v1487_v3  ;;  %488 = vst.msk [vmem:[#allocation2 + $0x10] sm:$0xff] (!%p238_p2), %vm484_vm1, %v1648_v14  ;;  %492 = vst.msk [vmem:[#allocation2 + $0x30] sm:$0xff] (!%p238_p2), %vm484_vm1, %v1648_v14  ;;  %1528 = vmatprep.subr.bf16.mxu1 (!%p238_p2), %v1651_v49  ;;  %vm620_vm4 = vcmask (!%p238_p2), 392448   ;;  %v909_v61 = vld [vmem:[%s2145_s3 + $0x10] sm:$0xff] (!%p238_p2)  ;;  %v910_v62 = vld [vmem:[%s2145_s3 + $0x18] sm:$0xff] (!%p238_p2)  ;;  %s1652_s18 = smov (!%p238_p2), 96  }
   0xa   : > { %1492 = vmatprep.subr.bf16.mxu0 (!%p238_p2), %v1491_v5  ;;  %489 = vst.msk [vmem:[#allocation2 + $0x18] sm:$0x3] (!%p238_p2), %vm486_vm2, %v1648_v14  ;;  %493 = vst.msk [vmem:[#allocation2 + $0x38] sm:$0x3] (!%p238_p2), %vm486_vm2, %v1648_v14  ;;  %1537 = vmatpush1.bf16.msra.mxu1 (!%p238_p2), %v1496_v50  ;;  %v1499_v0 = vpack.c.bf16 (!%p238_p2), %v910_v62, %v909_v61  ;;  %s1653_s23 = smov (!%p238_p2), 48   ;;  %s1654_s30 = smov (!%p238_p2), 112  }
   0xb   : > { %494 = vst.msk [vmem:[#allocation2 + $0x40] sm:$0xff] (!%p238_p2), %vm484_vm1, %v1648_v14  ;;  %496 = vst.msk [vmem:[#allocation2 + $0x50] sm:$0xff] (!%p238_p2), %vm484_vm1, %v1648_v14  ;;  %1529 = vmatprep.subr.bf16.mxu1 (!%p238_p2), %v1651_v49  ;;  %s1655_s8 = smov (!%p238_p2), 80   ;;  %v920_v47 = vld [vmem:[%s2145_s3 + $0x68] sm:$0xff] (!%p238_p2)  ;;  %s1656_s17 = smov (!%p238_p2), 64   ;;  %vm669_vm5 = vcmask (!%p238_p2), 523648  }
   0xc   : > { %495 = vst.msk [vmem:[#allocation2 + $0x48] sm:$0x3] (!%p238_p2), %vm486_vm2, %v1648_v14  ;;  %497 = vst.msk [vmem:[#allocation2 + $0x58] sm:$0x3] (!%p238_p2), %vm486_vm2, %v1648_v14  ;;  %vm718_vm6 = vcmask (!%p238_p2), 654848   ;;  %vm767_vm7 = vcmask (!%p238_p2), 786048  }
   0xd   : > { %s2151_s25 = smov (!%p269_p3, %s1382_s25), 1  ;;  %1494 = vmatpush3.bf16.msra.mxu0 %v1491_v5  ;;  %498 = vst.msk [vmem:[#allocation2 + $0x60] sm:$0xff] %vm484_vm1, %v1648_v14  ;;  %500 = vst.msk [vmem:[#allocation2 + $0x70] sm:$0xff] %vm484_vm1, %v1648_v14  ;;  %vm817_vm8 = vcmask 917248   ;;  %vm866_vm9 = vcmask 1048448   ;;  %vm1657_vm10 = vmmov 0  }
   0xe   : > { %s1430_s11 = sshll.u32 %s2151_s25, 6  ;;  %499 = vst.msk [vmem:[#allocation2 + $0x68] sm:$0x3] %vm486_vm2, %v1648_v14  ;;  %501 = vst.msk [vmem:[#allocation2 + $0x78] sm:$0x3] %vm486_vm2, %v1648_v14  ;;  %v515_v45 = vld [vmem:[#allocation2] sm:$0xff]  ;;  %1495 = vmatprep.subr.bf16.mxu0 %v1651_v49  ;;  %1538 = vmatpush1.bf16.msra.mxu1 %v1499_v0 }
   0xf   : > { %s1726_s14 = scalar_lea.vmem %s2142_s0, %s1430_s11  ;;  %502 = vst.msk [vmem:[#allocation2 + $0x80] sm:$0xff] %vm484_vm1, %v1648_v14  ;;  %504 = vst.msk [vmem:[#allocation2 + $0x90] sm:$0xff] %vm484_vm1, %v1648_v14  ;;  %v580_v15 = vld [vmem:[#allocation2 + $0x2] sm:$0xff]  ;;  %1530 = vmatprep.subr.bf16.mxu1 %v1651_v49  ;;  %vm1219_vm11 = vcmask 64512   ;;  %s278_s22 = scalar_lea.vmem %s2149_s7, %s1430_s11 }
  0x10   : > { %v279_v6 = vld [vmem:[%s1726_s14] sm:$0xff]  ;;  %v280_v7 = vld [vmem:[%s1726_s14 + $0x8] sm:$0xff]  ;;  %v281_v8 = vld [vmem:[%s1726_s14 + $0x10] sm:$0xff]  ;;  %503 = vst.msk [vmem:[#allocation2 + $0x88] sm:$0x3] %vm486_vm2, %v1648_v14  ;;  %596 = vrot.lane.b32.xlu1 %v580_v15, %s1649_s15 }
  0x11   : > { %1459 = vmatprep.mubr.msk.f32.mxu0 %vm298_vm0, %v279_v6  ;;  %v282_v9 = vld [vmem:[%s1726_s14 + $0x18] sm:$0xff]  ;;  %v283_v10 = vld [vmem:[%s1726_s14 + $0x20] sm:$0xff]  ;;  %v284_v11 = vld [vmem:[%s1726_s14 + $0x28] sm:$0xff]  ;;  %505 = vst.msk [vmem:[#allocation2 + $0x98] sm:$0x3] %vm486_vm2, %v1648_v14 }
  0x12   : > { %1460 = vmatmul.mubr.msk.f32.vlgmr.msra.gmra.mrb[0].mxu0 %vm298_vm0, %v280_v7  ;;  %v285_v12 = vld [vmem:[%s1726_s14 + $0x30] sm:$0xff]  ;;  %v286_v13 = vld [vmem:[%s1726_s14 + $0x38] sm:$0xff]  ;;  %v531_v16 = vld [vmem:[#allocation2 + $0x1] sm:$0xff]  ;;  %523 = vst.msk [vmem:[#allocation3] sm:$0xff] %vm484_vm1, %v515_v45 }
  0x13   : > { %1462 = vmatprep.mubr.msk.f32.mxu0 %vm298_vm0, %v281_v8  ;;  %547 = vrot.lane.b32.xlu0 %v531_v16, %s1650_s16  ;;  %v911_v7 = vld [vmem:[%s2145_s3 + $0x20] sm:$0xff]  ;;  %v912_v8 = vld [vmem:[%s2145_s3 + $0x28] sm:$0xff]  ;;  %v913_v16 = vld [vmem:[%s2145_s3 + $0x30] sm:$0xff] }
  0x14   : > { %1497 = vmatpush1.bf16.msra.mxu0 %v1496_v50 }
  0x15   : > { %1498 = vmatprep.subr.bf16.mxu0 %v1651_v49 }
  0x16   : > { %1463 = vmatmul.mubr.msk.f32.gmra.mrb[2].mxu0 %vm298_vm0, %v282_v9 }
  0x17   : > { %1465 = vmatprep.mubr.msk.f32.mxu0 %vm298_vm0, %v283_v10  ;;  %v1502_v10 = vpack.c.bf16 %v912_v8, %v911_v7  ;;  %v784_v7 = vld [vmem:[#allocation2 + $0x90] sm:$0xff] }
  0x18   : > { %1500 = vmatpush1.bf16.msra.mxu0 %v1499_v0 }
  0x19   : > { %1501 = vmatprep.subr.bf16.mxu0 %v1651_v49  ;;  %1539 = vmatpush1.bf16.msra.mxu1 %v1502_v10 }
  0x1a   : > { %1466 = vmatmul.mubr.msk.f32.gmra.mrb[4].mxu0 %vm298_vm0, %v284_v11  ;;  %1531 = vmatprep.subr.bf16.mxu1 %v1651_v49 }
  0x1b   : > { %1468 = vmatprep.mubr.msk.f32.mxu0 %vm298_vm0, %v285_v12 }
  0x1c   : > { %1503 = vmatpush1.bf16.msra.mxu0 %v1502_v10 }
  0x1d   : > { %1504 = vmatprep.subr.bf16.mxu0 %v1651_v49 }
  0x1e   : > { %1469 = vmatmul.mubr.msk.f32.gmra.mrb[6].mxu0 %vm298_vm0, %v286_v13 }
  0x82   : > { %v597_v55 = vpop.permute.xlu1 %596 }
  0x85   : > { %v548_v56 = vpop.permute.xlu0 %547 }
  0x86   : > { %572 = vst.msk [vmem:[#allocation3] sm:$0xff] %vm571_vm3, %v548_v56 }
  0x87   : > { %621 = vst.msk [vmem:[#allocation3] sm:$0xff] %vm620_vm4, %v597_v55 }
  0xe5   : > { %v1461_v18 = vpop.f32.mrb[0].mxu0 }
  0xe6   : > { %v1789_v19 = vadd.f32 %v1461_v18, %v1391_v17  ;;  %v389_v20 = vpop.f32.mrb[1].mxu0 }
  0xe7   : > { %v1791_v21 = vadd.f32 %v1391_v17, %v389_v20 }
  0xe8   : > { %v1401_v22 = vmul.f32 -1.442695, %v1789_v19 }
  0xe9   : > { %v1400_v23 = vmul.f32 -1.442695, %v1791_v21  ;;  %v1464_v24 = vpop.f32.mrb[2].mxu0 }
  0xea   : > { %1564 = vpow2.f32 %v1401_v22  ;;  %v1795_v25 = vadd.f32 %v1464_v24, %v1391_v17  ;;  %v399_v26 = vpop.f32.mrb[3].mxu0 }
  0xeb   : > { %1566 = vpow2.f32 %v1400_v23  ;;  %v1797_v27 = vadd.f32 %v1391_v17, %v399_v26 }
  0xec   : > { %v1403_v28 = vmul.f32 -1.442695, %v1795_v25 }
  0xed   : > { %v1402_v29 = vmul.f32 -1.442695, %v1797_v27  ;;  %v1467_v30 = vpop.f32.mrb[4].mxu0 }
  0xee   : > { %1568 = vpow2.f32 %v1403_v28  ;;  %v1801_v31 = vadd.f32 %v1467_v30, %v1391_v17  ;;  %v409_v32 = vpop.f32.mrb[5].mxu0  ;;  %v915_v28 = vld [vmem:[%s2145_s3 + $0x40] sm:$0xff] }
  0xef   : > { %1570 = vpow2.f32 %v1402_v29  ;;  %v1803_v33 = vadd.f32 %v1391_v17, %v409_v32  ;;  %v916_v29 = vld [vmem:[%s2145_s3 + $0x48] sm:$0xff] }
  0xf0   : > { %v1405_v34 = vmul.f32 -1.442695, %v1801_v31 }
  0xf1   : > { %v1404_v35 = vmul.f32 -1.442695, %v1803_v33  ;;  %v1470_v36 = vpop.f32.mrb[6].mxu0 }
  0xf2   : > { %1572 = vpow2.f32 %v1405_v34  ;;  %v1807_v37 = vadd.f32 %v1470_v36, %v1391_v17  ;;  %v419_v38 = vpop.f32.mrb[7].mxu0 }
  0xf3   : > { %1574 = vpow2.f32 %v1404_v35  ;;  %v1809_v39 = vadd.f32 %v1391_v17, %v419_v38  ;;  %v914_v17 = vld [vmem:[%s2145_s3 + $0x38] sm:$0xff]  ;;  %v917_v38 = vld [vmem:[%s2145_s3 + $0x50] sm:$0xff] }
  0xf4   : > { %v1565_v40 = vpop.eup %1564  ;;  %v1407_v41 = vmul.f32 -1.442695, %v1807_v37  ;;  %v1505_v18 = vpack.c.bf16 %v914_v17, %v913_v16 }
  0xf5   : > { %v1567_v42 = vpop.eup %1566  ;;  %v453_v43 = vadd.f32 1.0, %v1565_v40  ;;  %v1406_v44 = vmul.f32 -1.442695, %v1809_v39  ;;  %v918_v40 = vld [vmem:[%s2145_s3 + $0x58] sm:$0xff] }
  0xf6   : > { %v452_v46 = vadd.f32 1.0, %v1567_v42  ;;  %1576 = vpow2.f32 %v1407_v41  ;;  %1506 = vmatpush1.bf16.msra.mxu0 %v1505_v18  ;;  %1540 = vmatpush1.bf16.msra.mxu1 %v1505_v18  ;;  %v1511_v41 = vpack.c.bf16 %v918_v40, %v917_v38 }
  0xf7   : > { %1578 = vrcp.f32 %v453_v43  ;;  %1507 = vmatprep.subr.bf16.mxu0 %v1651_v49  ;;  %1532 = vmatprep.subr.bf16.mxu1 %v1651_v49 }
  0xf8   : > { %v1569_v51 = vpop.eup %1568  ;;  %1580 = vrcp.f32 %v452_v46  ;;  %v919_v46 = vld [vmem:[%s2145_s3 + $0x60] sm:$0xff] }
  0xf9   : > { %v1571_v52 = vpop.eup %1570  ;;  %v455_v53 = vadd.f32 1.0, %v1569_v51  ;;  %1582 = vpow2.f32 %v1406_v44  ;;  %v1514_v48 = vpack.c.bf16 %v920_v47, %v919_v46 }
  0xfa   : > { %v454_v54 = vadd.f32 1.0, %v1571_v52  ;;  %v921_v52 = vld [vmem:[%s2145_s3 + $0x70] sm:$0xff] }
  0xfb   : > { %1584 = vrcp.f32 %v455_v53  ;;  %v922_v53 = vld [vmem:[%s2145_s3 + $0x78] sm:$0xff] }
  0xfc   : > { %v1573_v57 = vpop.eup %1572  ;;  %1586 = vrcp.f32 %v454_v54  ;;  %v1517_v54 = vpack.c.bf16 %v922_v53, %v921_v52 }
  0xfd   : > { %v1575_v58 = vpop.eup %1574  ;;  %v457_v59 = vadd.f32 1.0, %v1573_v57 }
  0xfe   : > { %v456_v60 = vadd.f32 1.0, %v1575_v58 }
  0xff   : > { %1588 = vrcp.f32 %v457_v59  ;;  %v923_v59 = vld [vmem:[%s2145_s3 + $0x80] sm:$0xff] }
 0x100   : > { %v1577_v63 = vpop.eup %1576  ;;  %1590 = vrcp.f32 %v456_v60  ;;  %v924_v60 = vld [vmem:[%s2145_s3 + $0x88] sm:$0xff] }
 0x101   : > { %v1579_v1 = vpop.eup %1578  ;;  %v459_v2 = vadd.f32 1.0, %v1577_v63  ;;  %v1520_v61 = vpack.c.bf16 %v924_v60, %v923_v59 }
 0x102   : > { %v1581_v3 = vpop.eup %1580  ;;  %v477_v4 = vmul.f32 %v1579_v1, %v1789_v19 }
 0x103   : > { %v1583_v5 = vpop.eup %1582  ;;  %v476_v6 = vmul.f32 %v1581_v3, %v1791_v21  ;;  %1592 = vrcp.f32 %v459_v2 }
 0x104   : > { %508 = vst.msk [vmem:[#allocation2 + $0x21] sm:$0xff] %vm484_vm1, %v477_v4  ;;  %v458_v9 = vadd.f32 1.0, %v1583_v5  ;;  %v882_v5 = vld [vmem:[#allocation2 + $0x92] sm:$0xff] }
 0x105   : > { %v1585_v11 = vpop.eup %1584  ;;  %507 = vst.msk [vmem:[#allocation2 + $0x11] sm:$0xff] %vm484_vm1, %v476_v6  ;;  %890 = vst.msk [vmem:[#allocation3 + $0x78] sm:$0xff] %vm484_vm1, %v882_v5  ;;  %v833_v6 = vld [vmem:[#allocation2 + $0x91] sm:$0xff] }
 0x106   : > { %v1587_v12 = vpop.eup %1586  ;;  %v479_v13 = vmul.f32 %v1585_v11, %v1795_v25  ;;  %1594 = vrcp.f32 %v458_v9 }
 0x107   : > { %v478_v15 = vmul.f32 %v1587_v12, %v1797_v27 }
 0x108   : > { %510 = vst.msk [vmem:[#allocation2 + $0x41] sm:$0xff] %vm484_vm1, %v479_v13 }
 0x109   : > { %v1589_v19 = vpop.eup %1588  ;;  %509 = vst.msk [vmem:[#allocation2 + $0x31] sm:$0xff] %vm484_vm1, %v478_v15 }
 0x10a   : > { %v1591_v20 = vpop.eup %1590  ;;  %v481_v21 = vmul.f32 %v1589_v19, %v1801_v31  ;;  %v1508_v31 = vpack.c.bf16 %v916_v29, %v915_v28 }
 0x10b   : > { %v480_v22 = vmul.f32 %v1591_v20, %v1803_v33  ;;  %v777_v23 = vld [vmem:[#allocation2 + $0x20] sm:$0xff] }
 0x10c   : > { %v533_v24 = vld [vmem:[#allocation2 + $0x21] sm:$0xff]  ;;  %512 = vst.msk [vmem:[#allocation2 + $0x61] sm:$0xff] %vm484_vm1, %v481_v21  ;;  %793 = vrot.lane.b32.xlu1 %v777_v23, %s1652_s18  ;;  %v629_v26 = vld [vmem:[#allocation2 + $0x10] sm:$0xff]  ;;  %525 = vst.msk [vmem:[#allocation3 + $0x20] sm:$0xff] %vm484_vm1, %v777_v23  ;;  %1509 = vmatpush1.bf16.msra.mxu0 %v1508_v31 }
 0x10d   : > { %v582_v25 = vld [vmem:[#allocation2 + $0x22] sm:$0xff]  ;;  %551 = vrot.lane.b32.xlu0 %v533_v24, %s1650_s16  ;;  %v1593_v27 = vpop.eup %1592  ;;  %511 = vst.msk [vmem:[#allocation2 + $0x51] sm:$0xff] %vm484_vm1, %v480_v22  ;;  %524 = vst.msk [vmem:[#allocation3 + $0x10] sm:$0xff] %vm484_vm1, %v629_v26  ;;  %1541 = vmatpush1.bf16.msra.mxu1 %v1508_v31  ;;  %v678_v57 = vld [vmem:[#allocation2 + $0x11] sm:$0xff] }
 0x10e   : > { %883 = vst.msk [vmem:[#allocation3 + $0x8] sm:$0xff] %vm484_vm1, %v582_v25  ;;  %v483_v30 = vmul.f32 %v1593_v27, %v1807_v37  ;;  %1510 = vmatprep.subr.bf16.mxu0 %v1651_v49  ;;  %1533 = vmatprep.subr.bf16.mxu1 %v1651_v49  ;;  %v727_v62 = vld [vmem:[#allocation2 + $0x12] sm:$0xff] }
 0x10f   : > { %v1874_v32 = vld [vmem:[#allocation2 + $0x42] sm:$0xff] }
 0x110   : > { %v1876_v33 = vld [vmem:[#allocation2 + $0x40] sm:$0xff]  ;;  %v1595_v34 = vpop.eup %1594  ;;  %647 = vrot.lane.b32.xlu1 %v777_v23, %s1653_s23  ;;  %885 = vst.msk [vmem:[#allocation3 + $0x28] sm:$0xff] %vm484_vm1, %v1874_v32  ;;  %514 = vst.msk [vmem:[#allocation2 + $0x81] sm:$0xff] %vm484_vm1, %v483_v30  ;;  %v1883_v35 = vld [vmem:[#allocation2 + $0x32] sm:$0xff]  ;;  %1512 = vmatpush1.bf16.msra.mxu0 %v1511_v41 }
 0x111   : > { %600 = vrot.lane.b32.xlu0 %v582_v25, %s1649_s15  ;;  %v1885_v36 = vld [vmem:[#allocation2 + $0x30] sm:$0xff]  ;;  %527 = vst.msk [vmem:[#allocation3 + $0x40] sm:$0xff] %vm484_vm1, %v1876_v33  ;;  %v482_v37 = vmul.f32 %v1595_v34, %v1809_v39  ;;  %884 = vst.msk [vmem:[#allocation3 + $0x18] sm:$0xff] %vm484_vm1, %v1883_v35  ;;  %1513 = vmatprep.subr.bf16.mxu0 %v1651_v49  ;;  %v828_v58 = vld [vmem:[#allocation2 + $0x41] sm:$0xff] }
 0x112   : > { %526 = vst.msk [vmem:[#allocation3 + $0x30] sm:$0xff] %vm484_vm1, %v1885_v36  ;;  %1542 = vmatpush1.bf16.msra.mxu1 %v1511_v41  ;;  %v827_v63 = vld [vmem:[#allocation2 + $0x31] sm:$0xff] }
 0x113   : > { %513 = vst.msk [vmem:[#allocation2 + $0x71] sm:$0xff] %vm484_vm1, %v482_v37  ;;  %v1903_v42 = vld [vmem:[#allocation2 + $0x60] sm:$0xff]  ;;  %1534 = vmatprep.subr.bf16.mxu1 %v1651_v49 }
 0x114   : > { %842 = vrot.lane.b32.xlu1 %v533_v24, %s1654_s30  ;;  %v1907_v43 = vld [vmem:[#allocation2 + $0x62] sm:$0xff]  ;;  %v1909_v44 = vld [vmem:[#allocation2 + $0x50] sm:$0xff]  ;;  %529 = vst.msk [vmem:[#allocation3 + $0x60] sm:$0xff] %vm484_vm1, %v1903_v42  ;;  %1515 = vmatpush1.bf16.msra.mxu0 %v1514_v48 }
 0x115   : > { %v892_v39 = vld [vmem:[#allocation3 + $0x8] sm:$0xff]  ;;  %745 = vrot.lane.b32.xlu0 %v582_v25, %s1655_s8  ;;  %v1914_v45 = vld [vmem:[#allocation2 + $0x52] sm:$0xff]  ;;  %528 = vst.msk [vmem:[#allocation3 + $0x50] sm:$0xff] %vm484_vm1, %v1909_v44  ;;  %887 = vst.msk [vmem:[#allocation3 + $0x48] sm:$0xff] %vm484_vm1, %v1907_v43  ;;  %1516 = vmatprep.subr.bf16.mxu0 %v1651_v49 }
 0x116   : > { %1409 = vmatprep.mubr.msk.f32.mxu0 %vm484_vm1, %v892_v39  ;;  %886 = vst.msk [vmem:[#allocation3 + $0x38] sm:$0xff] %vm484_vm1, %v1914_v45  ;;  %1543 = vmatpush1.bf16.msra.mxu1 %v1514_v48  ;;  %v683_v0 = vld [vmem:[#allocation2 + $0x61] sm:$0xff]  ;;  %v829_v1 = vld [vmem:[#allocation2 + $0x51] sm:$0xff] }
 0x117   : > { %v896_v50 = vld [vmem:[#allocation3 + $0x28] sm:$0xff]  ;;  %1535 = vmatprep.subr.bf16.mxu1 %v1651_v49  ;;  %v636_v2 = vld [vmem:[#allocation2 + $0x80] sm:$0xff] }
 0x118   : > { %696 = vrot.lane.b32.xlu1 %v533_v24, %s1656_s17  ;;  %1411 = vmatprep.mubr.msk.f32.mxu1 %vm484_vm1, %v896_v50  ;;  %v1932_v51 = vld [vmem:[#allocation2 + $0x82] sm:$0xff]  ;;  %v894_v28 = vld [vmem:[#allocation3 + $0x18] sm:$0xff] }
 0x119   : > { %645 = vrot.lane.b32.xlu0 %v629_v26, %s1653_s23  ;;  %889 = vst.msk [vmem:[#allocation3 + $0x68] sm:$0xff] %vm484_vm1, %v1932_v51  ;;  %1518 = vmatpush1.bf16.msra.mxu0 %v1517_v54  ;;  %v685_v3 = vld [vmem:[#allocation2 + $0x81] sm:$0xff] }
 0x11a   : > { %v782_v55 = vld [vmem:[#allocation2 + $0x70] sm:$0xff]  ;;  %1519 = vmatprep.subr.bf16.mxu0 %v1651_v49  ;;  %1544 = vmatpush1.bf16.msra.mxu1 %v1517_v54 }
 0x11b   : > { %v1943_v56 = vld [vmem:[#allocation2 + $0x72] sm:$0xff]  ;;  %530 = vst.msk [vmem:[#allocation3 + $0x70] sm:$0xff] %vm484_vm1, %v782_v55  ;;  %1536 = vmatprep.subr.bf16.mxu1 %v1651_v49 }
 0x11c   : > { %888 = vst.msk [vmem:[#allocation3 + $0x58] sm:$0xff] %vm484_vm1, %v1943_v56  ;;  %694 = vrot.lane.b32.xlu1 %v678_v57, %s1656_s17  ;;  %v831_v4 = vld [vmem:[#allocation2 + $0x71] sm:$0xff] }
 0x11d   : > { %846 = vrot.lane.b32.xlu0 %v828_v58, %s1654_s30  ;;  %1521 = vmatpush1.bf16.msra.mxu0 %v1520_v61  ;;  %v898_v39 = vld [vmem:[#allocation3 + $0x38] sm:$0xff] }
 0x11e   : > { %1545 = vmatpush1.bf16.msra.mxu1 %v1520_v61  ;;  %1522 = vmatprep.subr.bf16.mxu0 %v1651_v49 }
 0x120   : > { %549 = vrot.lane.b32.xlu1 %v678_v57, %s1650_s16 }
 0x121   : > { %700 = vrot.lane.b32.xlu0 %v828_v58, %s1656_s17 }
 0x124   : > { %743 = vrot.lane.b32.xlu1 %v727_v62, %s1655_s8 }
 0x125   : > { %555 = vrot.lane.b32.xlu0 %v828_v58, %s1650_s16 }
 0x128   : > { %598 = vrot.lane.b32.xlu1 %v727_v62, %s1649_s15  ;;  %v902_v62 = vld [vmem:[#allocation3 + $0x58] sm:$0xff] }
 0x129   : > { %749 = vrot.lane.b32.xlu0 %v1874_v32, %s1655_s8 }
 0x12c   : > { %797 = vrot.lane.b32.xlu1 %v1876_v33, %s1652_s18 }
 0x12d   : > { %604 = vrot.lane.b32.xlu0 %v1874_v32, %s1649_s15 }
 0x130   : > { %651 = vrot.lane.b32.xlu1 %v1876_v33, %s1653_s23 }
 0x131   : > { %747 = vrot.lane.b32.xlu0 %v1883_v35, %s1655_s8 }
 0x134   : > { %649 = vrot.lane.b32.xlu1 %v1885_v36, %s1653_s23 }
 0x135   : > { %602 = vrot.lane.b32.xlu0 %v1883_v35, %s1649_s15 }
 0x138   : > { %698 = vrot.lane.b32.xlu1 %v827_v63, %s1656_s17 }
 0x139   : > { %844 = vrot.lane.b32.xlu0 %v827_v63, %s1654_s30 }
 0x13c   : > { %553 = vrot.lane.b32.xlu1 %v827_v63, %s1650_s16 }
 0x13d   : > { %801 = vrot.lane.b32.xlu0 %v1903_v42, %s1652_s18 }
 0x140   : > { %795 = vrot.lane.b32.xlu1 %v1885_v36, %s1652_s18 }
 0x141   : > { %704 = vrot.lane.b32.xlu0 %v683_v0, %s1656_s17 }
 0x144   : > { %655 = vrot.lane.b32.xlu1 %v1903_v42, %s1653_s23 }
 0x145   : > { %753 = vrot.lane.b32.xlu0 %v1907_v43, %s1655_s8 }
 0x148   : > { %850 = vrot.lane.b32.xlu1 %v683_v0, %s1654_s30 }
 0x149   : > { %799 = vrot.lane.b32.xlu0 %v1909_v44, %s1652_s18 }
 0x14c   : > { %559 = vrot.lane.b32.xlu1 %v683_v0, %s1650_s16 }
 0x14d   : > { %653 = vrot.lane.b32.xlu0 %v1909_v44, %s1653_s23 }
 0x150   : > { %608 = vrot.lane.b32.xlu1 %v1907_v43, %s1649_s15 }
 0x151   : > { %848 = vrot.lane.b32.xlu0 %v829_v1, %s1654_s30 }
 0x154   : > { %557 = vrot.lane.b32.xlu1 %v829_v1, %s1650_s16 }
 0x155   : > { %702 = vrot.lane.b32.xlu0 %v829_v1, %s1656_s17 }
 0x158   : > { %751 = vrot.lane.b32.xlu1 %v1914_v45, %s1655_s8 }
 0x159   : > { %606 = vrot.lane.b32.xlu0 %v1914_v45, %s1649_s15 }
 0x15c   : > { %805 = vrot.lane.b32.xlu1 %v636_v2, %s1652_s18 }
 0x15d   : > { %659 = vrot.lane.b32.xlu0 %v636_v2, %s1653_s23 }
 0x160   : > { %854 = vrot.lane.b32.xlu1 %v685_v3, %s1654_s30 }
 0x161   : > { %708 = vrot.lane.b32.xlu0 %v685_v3, %s1656_s17 }
 0x164   : > { %657 = vrot.lane.b32.xlu1 %v782_v55, %s1653_s23 }
 0x165   : > { %803 = vrot.lane.b32.xlu0 %v782_v55, %s1652_s18 }
 0x168   : > { %706 = vrot.lane.b32.xlu1 %v831_v4, %s1656_s17 }
 0x169   : > { %852 = vrot.lane.b32.xlu0 %v831_v4, %s1654_s30 }
 0x16c   : > { %755 = vrot.lane.b32.xlu1 %v1943_v56, %s1655_s8 }
 0x16d   : > { %561 = vrot.lane.b32.xlu0 %v831_v4, %s1650_s16 }
 0x170   : > { %757 = vrot.lane.b32.xlu1 %v1932_v51, %s1655_s8 }
 0x171   : > { %610 = vrot.lane.b32.xlu0 %v1943_v56, %s1649_s15  ;;  %v900_v56 = vld [vmem:[#allocation3 + $0x48] sm:$0xff] }
 0x174   : > { %856 = vrot.lane.b32.xlu1 %v833_v6, %s1654_s30 }
 0x175   : > { %807 = vrot.lane.b32.xlu0 %v784_v7, %s1652_s18 }
 0x17e   : > { %v794_v8 = vpop.permute.xlu1 %793 }
 0x17f   : > { %v552_v9 = vpop.permute.xlu0 %551 }
 0x180   : > { %574 = vst.msk [vmem:[#allocation3 + $0x20] sm:$0xff] %vm571_vm3, %v552_v9 }
 0x182   : > { %v648_v10 = vpop.permute.xlu1 %647 }
 0x183   : > { %v601_v11 = vpop.permute.xlu0 %600 }
 0x184   : > { %623 = vst.msk [vmem:[#allocation3 + $0x20] sm:$0xff] %vm620_vm4, %v601_v11  ;;  %v906_v11 = vld [vmem:[#allocation3 + $0x78] sm:$0xff] }
 0x186   : > { %v843_v12 = vpop.permute.xlu1 %842 }
 0x187   : > { %v746_v13 = vpop.permute.xlu0 %745 }
 0x18a   : > { %v697_v15 = vpop.permute.xlu1 %696 }
 0x18b   : > { %v646_v16 = vpop.permute.xlu0 %645 }
 0x18c   : > { %670 = vst.msk [vmem:[#allocation3] sm:$0xff] %vm669_vm5, %v646_v16  ;;  %v1141_v16 = vld [vmem:[%s2147_s5 + $0x8] sm:$0xff] }
 0x18e   : > { %v695_v17 = vpop.permute.xlu1 %694 }
 0x18f   : > { %719 = vst.msk [vmem:[#allocation3] sm:$0xff] %vm718_vm6, %v695_v17  ;;  %v847_v18 = vpop.permute.xlu0 %846 }
 0x192   : > { %v550_v19 = vpop.permute.xlu1 %549 }
 0x193   : > { %v701_v20 = vpop.permute.xlu0 %700  ;;  %573 = vst.msk [vmem:[#allocation3 + $0x10] sm:$0xff] %vm571_vm3, %v550_v19  ;;  %v1143_v19 = vld [vmem:[%s2147_s5 + $0x18] sm:$0xff] }
 0x196   : > { %v744_v21 = vpop.permute.xlu1 %743 }
 0x197   : > { %v556_v22 = vpop.permute.xlu0 %555  ;;  %768 = vst.msk [vmem:[#allocation3] sm:$0xff] %vm767_vm7, %v744_v21 }
 0x198   : > { %576 = vst.msk [vmem:[#allocation3 + $0x40] sm:$0xff] %vm571_vm3, %v556_v22 }
 0x199   : > { %818 = vst.msk [vmem:[#allocation3] sm:$0xff] %vm817_vm8, %v794_v8  ;;  %v904_v8 = vld [vmem:[#allocation3 + $0x68] sm:$0xff] }
 0x19a   : > { %867 = vst.msk [vmem:[#allocation3] sm:$0xff] %vm866_vm9, %v843_v12  ;;  %v599_v23 = vpop.permute.xlu1 %598 }
 0x19b   : > { %v750_v24 = vpop.permute.xlu0 %749  ;;  %622 = vst.msk [vmem:[#allocation3 + $0x10] sm:$0xff] %vm620_vm4, %v599_v23 }
 0x19c   : > { %671 = vst.msk [vmem:[#allocation3 + $0x10] sm:$0xff] %vm669_vm5, %v648_v10 }
 0x19d   : > { %720 = vst.msk [vmem:[#allocation3 + $0x10] sm:$0xff] %vm718_vm6, %v697_v15  ;;  %v1140_v15 = vld [vmem:[%s2147_s5] sm:$0xff] }
 0x19e   : > { %769 = vst.msk [vmem:[#allocation3 + $0x10] sm:$0xff] %vm767_vm7, %v746_v13  ;;  %v798_v25 = vpop.permute.xlu1 %797  ;;  %v1523_v17 = vpack.c.bf16 %v1141_v16, %v1140_v15 }
 0x19f   : > { %v605_v26 = vpop.permute.xlu0 %604 }
 0x1a0   : > { %625 = vst.msk [vmem:[#allocation3 + $0x40] sm:$0xff] %vm620_vm4, %v605_v26 }
 0x1a1   : > { %v891_v27 = vld [vmem:[#allocation3] sm:$0xff] }
 0x1a2   : > { %1021 = vmatmul.mubr.f32.vlgmr.msra.gmra.mrb[8].mxu0 %v891_v27  ;;  %v652_v29 = vpop.permute.xlu1 %651 }
 0x1a3   : > { %1410 = vmatprep.mubr.msk.f32.mxu0 %vm484_vm1, %v894_v28  ;;  %v748_v30 = vpop.permute.xlu0 %747  ;;  %1524 = vmatpush3.bf16.msra.mxu0 %v1523_v17 }
 0x1a4   : > { %1525 = vmatprep.subr.bf16.mxu0 %v1651_v49 }
 0x1a6   : > { %v650_v31 = vpop.permute.xlu1 %649 }
 0x1a7   : > { %v603_v32 = vpop.permute.xlu0 %602  ;;  %672 = vst.msk [vmem:[#allocation3 + $0x20] sm:$0xff] %vm669_vm5, %v650_v31 }
 0x1aa   : > { %v699_v33 = vpop.permute.xlu1 %698 }
 0x1ab   : > { %v845_v34 = vpop.permute.xlu0 %844  ;;  %721 = vst.msk [vmem:[#allocation3 + $0x20] sm:$0xff] %vm718_vm6, %v699_v33 }
 0x1ac   : > { %770 = vst.msk [vmem:[#allocation3 + $0x20] sm:$0xff] %vm767_vm7, %v748_v30 }
 0x1ad   : > { %820 = vst.msk [vmem:[#allocation3 + $0x20] sm:$0xff] %vm817_vm8, %v798_v25 }
 0x1ae   : > { %869 = vst.msk [vmem:[#allocation3 + $0x20] sm:$0xff] %vm866_vm9, %v847_v18  ;;  %v554_v35 = vpop.permute.xlu1 %553  ;;  %v1142_v18 = vld [vmem:[%s2147_s5 + $0x10] sm:$0xff] }
 0x1af   : > { %v802_v36 = vpop.permute.xlu0 %801  ;;  %575 = vst.msk [vmem:[#allocation3 + $0x30] sm:$0xff] %vm571_vm3, %v554_v35 }
 0x1b0   : > { %624 = vst.msk [vmem:[#allocation3 + $0x30] sm:$0xff] %vm620_vm4, %v603_v32 }
 0x1b1   : > { %673 = vst.msk [vmem:[#allocation3 + $0x30] sm:$0xff] %vm669_vm5, %v652_v29  ;;  %v1408_v29 = vld [vmem:[%s2146_s4] ss:$0 sm:$0xff] }
 0x1b2   : > { %722 = vst.msk [vmem:[#allocation3 + $0x30] sm:$0xff] %vm718_vm6, %v701_v20  ;;  %v796_v37 = vpop.permute.xlu1 %795  ;;  %v1526_v20 = vpack.c.bf16 %v1143_v19, %v1142_v18 }
 0x1b3   : > { %771 = vst.msk [vmem:[#allocation3 + $0x30] sm:$0xff] %vm767_vm7, %v750_v24  ;;  %v705_v38 = vpop.permute.xlu0 %704 }
 0x1b4   : > { %819 = vst.msk [vmem:[#allocation3 + $0x10] sm:$0xff] %vm817_vm8, %v796_v37  ;;  %1527 = vmatpush3.bf16.msra.mxu0 %v1526_v20 }
 0x1b5   : > { %868 = vst.msk [vmem:[#allocation3 + $0x10] sm:$0xff] %vm866_vm9, %v845_v34  ;;  %v895_v40 = vld [vmem:[#allocation3 + $0x20] sm:$0xff]  ;;  %1482 = vmatprep.subr.mxu0 %v1648_v14 }
 0x1b6   : > { %1031 = vmatmul.mubr.f32.vlgmr.msra.gmra.mrb[0].mxu1 %v895_v40  ;;  %v656_v41 = vpop.permute.xlu1 %655 }
 0x1b7   : > { %v754_v42 = vpop.permute.xlu0 %753  ;;  %1412 = vmatprep.mubr.msk.f32.mxu1 %vm484_vm1, %v898_v39 }
 0x1ba   : > { %v851_v43 = vpop.permute.xlu1 %850 }
 0x1bb   : > { %v800_v44 = vpop.permute.xlu0 %799 }
 0x1bc   : > { %v893_v45 = vld [vmem:[#allocation3 + $0x10] sm:$0xff]  ;;  %821 = vst.msk [vmem:[#allocation3 + $0x30] sm:$0xff] %vm817_vm8, %v800_v44 }
 0x1bd   : > { %1026 = vmatmul.mubr.f32.gmra.mrb[10].mxu0 %v893_v45 }
 0x1be   : > { %v560_v46 = vpop.permute.xlu1 %559  ;;  %1479 = vmatprep.mubr.msk.f32.mxu0 %vm1657_vm10, %v1648_v14 }
 0x1bf   : > { %v654_v47 = vpop.permute.xlu0 %653  ;;  %578 = vst.msk [vmem:[#allocation3 + $0x60] sm:$0xff] %vm571_vm3, %v560_v46 }
 0x1c0   : > { %674 = vst.msk [vmem:[#allocation3 + $0x40] sm:$0xff] %vm669_vm5, %v654_v47 }
 0x1c2   : > { %v609_v48 = vpop.permute.xlu1 %608 }
 0x1c3   : > { %v849_v50 = vpop.permute.xlu0 %848  ;;  %627 = vst.msk [vmem:[#allocation3 + $0x60] sm:$0xff] %vm620_vm4, %v609_v48 }
 0x1c4   : > { %870 = vst.msk [vmem:[#allocation3 + $0x30] sm:$0xff] %vm866_vm9, %v849_v50 }
 0x1c6   : > { %v558_v51 = vpop.permute.xlu1 %557 }
 0x1c7   : > { %v703_v52 = vpop.permute.xlu0 %702  ;;  %577 = vst.msk [vmem:[#allocation3 + $0x50] sm:$0xff] %vm571_vm3, %v558_v51 }
 0x1c8   : > { %723 = vst.msk [vmem:[#allocation3 + $0x40] sm:$0xff] %vm718_vm6, %v703_v52 }
 0x1ca   : > { %v752_v53 = vpop.permute.xlu1 %751 }
 0x1cb   : > { %v607_v54 = vpop.permute.xlu0 %606  ;;  %772 = vst.msk [vmem:[#allocation3 + $0x40] sm:$0xff] %vm767_vm7, %v752_v53  ;;  %v897_v55 = vld [vmem:[#allocation3 + $0x30] sm:$0xff] }
 0x1cc   : > { %626 = vst.msk [vmem:[#allocation3 + $0x50] sm:$0xff] %vm620_vm4, %v607_v54  ;;  %1036 = vmatmul.mubr.f32.gmra.mrb[2].mxu1 %v897_v55 }
 0x1cd   : > { %822 = vst.msk [vmem:[#allocation3 + $0x40] sm:$0xff] %vm817_vm8, %v802_v36  ;;  %1413 = vmatprep.mubr.msk.f32.mxu1 %vm484_vm1, %v900_v56 }
 0x1ce   : > { %675 = vst.msk [vmem:[#allocation3 + $0x50] sm:$0xff] %vm669_vm5, %v656_v41  ;;  %v806_v57 = vpop.permute.xlu1 %805 }
 0x1cf   : > { %871 = vst.msk [vmem:[#allocation3 + $0x40] sm:$0xff] %vm866_vm9, %v851_v43  ;;  %v660_v58 = vpop.permute.xlu0 %659 }
 0x1d0   : > { %724 = vst.msk [vmem:[#allocation3 + $0x50] sm:$0xff] %vm718_vm6, %v705_v38 }
 0x1d1   : > { %773 = vst.msk [vmem:[#allocation3 + $0x50] sm:$0xff] %vm767_vm7, %v754_v42 }
 0x1d2   : > { %v855_v59 = vpop.permute.xlu1 %854 }
 0x1d3   : > { %v709_v60 = vpop.permute.xlu0 %708 }
 0x1d6   : > { %v899_v61 = vld [vmem:[#allocation3 + $0x40] sm:$0xff]  ;;  %v658_v63 = vpop.permute.xlu1 %657 }
 0x1d7   : > { %1041 = vmatmul.mubr.f32.gmra.mrb[4].mxu1 %v899_v61  ;;  %v804_v0 = vpop.permute.xlu0 %803  ;;  %676 = vst.msk [vmem:[#allocation3 + $0x60] sm:$0xff] %vm669_vm5, %v658_v63 }
 0x1d8   : > { %1414 = vmatprep.mubr.msk.f32.mxu1 %vm484_vm1, %v902_v62  ;;  %823 = vst.msk [vmem:[#allocation3 + $0x50] sm:$0xff] %vm817_vm8, %v804_v0 }
 0x1da   : > { %v707_v1 = vpop.permute.xlu1 %706 }
 0x1db   : > { %v853_v2 = vpop.permute.xlu0 %852  ;;  %725 = vst.msk [vmem:[#allocation3 + $0x60] sm:$0xff] %vm718_vm6, %v707_v1 }
 0x1dc   : > { %872 = vst.msk [vmem:[#allocation3 + $0x50] sm:$0xff] %vm866_vm9, %v853_v2 }
 0x1de   : > { %v756_v3 = vpop.permute.xlu1 %755 }
 0x1df   : > { %v562_v4 = vpop.permute.xlu0 %561  ;;  %774 = vst.msk [vmem:[#allocation3 + $0x60] sm:$0xff] %vm767_vm7, %v756_v3 }
 0x1e0   : > { %579 = vst.msk [vmem:[#allocation3 + $0x70] sm:$0xff] %vm571_vm3, %v562_v4 }
 0x1e1   : > { %824 = vst.msk [vmem:[#allocation3 + $0x60] sm:$0xff] %vm817_vm8, %v806_v57 }
 0x1e2   : > { %873 = vst.msk [vmem:[#allocation3 + $0x60] sm:$0xff] %vm866_vm9, %v855_v59  ;;  %v758_v5 = vpop.permute.xlu1 %757 }
 0x1e3   : > { %v611_v6 = vpop.permute.xlu0 %610  ;;  %v901_v7 = vld [vmem:[#allocation3 + $0x50] sm:$0xff] }
 0x1e4   : > { %628 = vst.msk [vmem:[#allocation3 + $0x70] sm:$0xff] %vm620_vm4, %v611_v6  ;;  %1046 = vmatmul.mubr.f32.gmra.mrb[6].mxu1 %v901_v7 }
 0x1e5   : > { %677 = vst.msk [vmem:[#allocation3 + $0x70] sm:$0xff] %vm669_vm5, %v660_v58  ;;  %1415 = vmatprep.mubr.msk.f32.mxu1 %vm484_vm1, %v904_v8 }
 0x1e6   : > { %726 = vst.msk [vmem:[#allocation3 + $0x70] sm:$0xff] %vm718_vm6, %v709_v60  ;;  %v857_v9 = vpop.permute.xlu1 %856 }
 0x1e7   : > { %775 = vst.msk [vmem:[#allocation3 + $0x70] sm:$0xff] %vm767_vm7, %v758_v5  ;;  %v808_v10 = vpop.permute.xlu0 %807 }
 0x1e8   : > { %825 = vst.msk [vmem:[#allocation3 + $0x70] sm:$0xff] %vm817_vm8, %v808_v10 }
 0x1e9   : > { %v903_v12 = vld [vmem:[#allocation3 + $0x60] sm:$0xff]  ;;  %874 = vst.msk [vmem:[#allocation3 + $0x70] sm:$0xff] %vm866_vm9, %v857_v9 }
 0x1ea   : > { %1051 = vmatmul.mubr.f32.gmra.mrb[8].mxu1 %v903_v12 }
 0x1eb   : > { %1416 = vmatprep.mubr.msk.f32.mxu1 %vm484_vm1, %v906_v11 }
 0x1f0   : > { %v905_v13 = vld [vmem:[#allocation3 + $0x70] sm:$0xff] }
 0x1f1   : > { %1056 = vmatmul.mubr.f32.gmra.mrb[10].mxu1 %v905_v13 }
 0x275   : > { %v1022_v21 = vpop.f32.mrb[8].mxu0 }
 0x276   : > { %v1024_v22 = vpop.f32.mrb[9].mxu0  ;;  %v1023_v32 = vadd.f32 %v1408_v29, %v1022_v21 }
 0x278   : > { %v1417_v35 = vmul.f32 -1.442695, %v1023_v32 }
 0x289   : > { %v1032_v23 = vpop.f32.mrb[0].mxu1 }
 0x28a   : > { %v1034_v49 = vpop.f32.mrb[1].mxu1  ;;  %v1033_v34 = vadd.f32 %v1408_v29, %v1032_v23 }
 0x28c   : > { %v1419_v38 = vmul.f32 -1.442695, %v1033_v34 }
 0x290   : > { %v1027_v24 = vpop.f32.mrb[10].mxu0 }
 0x291   : > { %v1029_v25 = vpop.f32.mrb[11].mxu0  ;;  %v1028_v31 = vadd.f32 %v1408_v29, %v1027_v24 }
 0x293   : > { %v1418_v33 = vmul.f32 -1.442695, %v1028_v31 }
 0x295   : > { %1596 = vpow2.f32 %v1418_v33 }
 0x296   : > { %1598 = vpow2.f32 %v1417_v35 }
 0x297   : > { %1600 = vpow2.f32 %v1419_v38 }
 0x29f   : > { %v1037_v26 = vpop.f32.mrb[2].mxu1  ;;  %v1597_v45 = vpop.eup %1596 }
 0x2a0   : > { %v1039_v27 = vpop.f32.mrb[3].mxu1  ;;  %v1038_v36 = vadd.f32 %v1408_v29, %v1037_v26  ;;  %v1599_v50 = vpop.eup %1598  ;;  %v1086_v51 = vadd.f32 1.0, %v1597_v45 }
 0x2a1   : > { %v1601_v53 = vpop.eup %1600  ;;  %v1085_v54 = vadd.f32 1.0, %v1599_v50 }
 0x2a2   : > { %v1420_v40 = vmul.f32 -1.442695, %v1038_v36  ;;  %v1087_v57 = vadd.f32 1.0, %v1601_v53 }
 0x2a4   : > { %1602 = vpow2.f32 %v1420_v40 }
 0x2aa   : > { %v1042_v28 = vpop.f32.mrb[4].mxu1 }
 0x2ab   : > { %v1044_v30 = vpop.f32.mrb[5].mxu1  ;;  %v1043_v37 = vadd.f32 %v1408_v29, %v1042_v28 }
 0x2ad   : > { %v1421_v41 = vmul.f32 -1.442695, %v1043_v37 }
 0x2ae   : > { %v1603_v55 = vpop.eup %1602 }
 0x2af   : > { %1604 = vpow2.f32 %v1421_v41  ;;  %v1088_v59 = vadd.f32 1.0, %v1603_v55 }
 0x2b7   : > { %v1047_v39 = vpop.f32.mrb[6].mxu1 }
 0x2b8   : > { %v1048_v42 = vadd.f32 %v1408_v29, %v1047_v39  ;;  %v1049_v43 = vpop.f32.mrb[7].mxu1 }
 0x2b9   : > { %v1605_v56 = vpop.eup %1604 }
 0x2ba   : > { %v1422_v44 = vmul.f32 -1.442695, %v1048_v42  ;;  %v1089_v63 = vadd.f32 1.0, %v1605_v56 }
 0x2bc   : > { %1606 = vpow2.f32 %v1422_v44  ;;  %v1218_v44 = vld [vmem:[%s2148_s6] sm:$0xff] }
 0x2bd   : > { %v1052_v46 = vpop.f32.mrb[8].mxu1 }
 0x2be   : > { %v1053_v47 = vadd.f32 %v1408_v29, %v1052_v46  ;;  %v1054_v48 = vpop.f32.mrb[9].mxu1 }
 0x2c0   : > { %v1423_v52 = vmul.f32 -1.442695, %v1053_v47 }
 0x2c2   : > { %1608 = vpow2.f32 %v1423_v52 }
 0x2c3   : > { %1610 = vrcp.f32 %v1086_v51 }
 0x2c4   : > { %v1057_v58 = vpop.f32.mrb[10].mxu1  ;;  %1612 = vrcp.f32 %v1085_v54  ;;  %v1299_v54 = vlaneseq }
 0x2c5   : > { %v1058_v60 = vadd.f32 %v1408_v29, %v1057_v58  ;;  %v1059_v61 = vpop.f32.mrb[11].mxu1  ;;  %1614 = vrcp.f32 %v1087_v57 }
 0x2c6   : > { %v1607_v62 = vpop.eup %1606  ;;  %1616 = vrcp.f32 %v1088_v59  ;;  %v1300_v55 = vshrl.u32 %v1299_v54, 7 }
 0x2c7   : > { %v1424_v0 = vmul.f32 -1.442695, %v1058_v60  ;;  %v1090_v1 = vadd.f32 1.0, %v1607_v62 }
 0x2c8   : > { %v1301_v56 = vsub.s32 0, %v1300_v55 }
 0x2c9   : > { %1618 = vpow2.f32 %v1424_v0 }
 0x2ca   : > { %1620 = vrcp.f32 %v1089_v63 }
 0x2cb   : > { %1622 = vrcp.f32 %v1090_v1 }
 0x2cc   : > { %v1609_v2 = vpop.eup %1608 }
 0x2cd   : > { %v1091_v3 = vadd.f32 1.0, %v1609_v2  ;;  %v1611_v4 = vpop.eup %1610  ;;  %v1632_v2 = vld [vmem:[%s1726_s14] sm:$0xff] }
 0x2ce   : > { %v1613_v5 = vpop.eup %1612  ;;  %v1110_v6 = vmul.f32 %v1611_v4, %v1028_v31  ;;  %v1633_v4 = vld [vmem:[%s1726_s14 + $0x8] sm:$0xff] }
 0x2cf   : > { %1624 = vrcp.f32 %v1091_v3  ;;  %v1615_v7 = vpop.eup %1614  ;;  %v1109_v8 = vmul.f32 %v1613_v5, %v1023_v32 }
 0x2d0   : > { %v1617_v9 = vpop.eup %1616  ;;  %v1118_v11 = vsel %vm298_vm0, %v1110_v6, 0.0  ;;  %v1111_v16 = vmul.f32 %v1615_v7, %v1033_v34 }
 0x2d1   : > { %v1117_v15 = vsel %vm298_vm0, %v1109_v8, 0.0  ;;  %v1112_v17 = vmul.f32 %v1617_v9, %v1038_v36 }
 0x2d2   : > { %v1119_v19 = vadd.f32 %v1118_v11, %v1117_v15  ;;  %v1120_v22 = vsel %vm298_vm0, %v1111_v16, 0.0  ;;  %v1638_v15 = vld [vmem:[%s1726_s14 + $0x30] sm:$0xff] }
 0x2d3   : > { %v1619_v10 = vpop.eup %1618  ;;  %v1122_v23 = vsel %vm298_vm0, %v1112_v17, 0.0 }
 0x2d4   : > { %v1621_v12 = vpop.eup %1620  ;;  %v1092_v13 = vadd.f32 1.0, %v1619_v10  ;;  %v1121_v24 = vadd.f32 %v1120_v22, %v1119_v19  ;;  %v1636_v10 = vld [vmem:[%s1726_s14 + $0x20] sm:$0xff] }
 0x2d5   : > { %v1623_v18 = vpop.eup %1622  ;;  %v1113_v20 = vmul.f32 %v1621_v12, %v1043_v37  ;;  %v1637_v12 = vld [vmem:[%s1726_s14 + $0x28] sm:$0xff] }
 0x2d6   : > { %1626 = vrcp.f32 %v1092_v13  ;;  %v1114_v49 = vmul.f32 %v1623_v18, %v1048_v42  ;;  %v1123_v27 = vadd.f32 %v1122_v23, %v1121_v24 }
 0x2d7   : > { %v1124_v25 = vsel %vm298_vm0, %v1113_v20, 0.0 }
 0x2d8   : > { %v1126_v28 = vsel %vm298_vm0, %v1114_v49, 0.0  ;;  %v1125_v29 = vadd.f32 %v1124_v25, %v1123_v27 }
 0x2d9   : > { %v1625_v21 = vpop.eup %1624 }
 0x2da   : > { %v1115_v26 = vmul.f32 %v1625_v21, %v1053_v47  ;;  %v1127_v32 = vadd.f32 %v1126_v28, %v1125_v29 }
 0x2dc   : > { %v1128_v30 = vsel %vm298_vm0, %v1115_v26, 0.0 }
 0x2dd   : > { %v1129_v34 = vadd.f32 %v1128_v30, %v1127_v32 }
 0x2e0   : > { %v1627_v31 = vpop.eup %1626 }
 0x2e1   : > { %v1116_v33 = vmul.f32 %v1627_v31, %v1058_v60 }
 0x2e3   : > { %v1130_v35 = vsel %vm298_vm0, %v1116_v33, 0.0 }
 0x2e4   : > { %v1131_v36 = vadd.f32 %v1130_v35, %v1129_v34 }
 0x2e6   : > { %v1132_v37 = vrot.slane %v1131_v36, 4 }
 0x2e8   : > { %v1133_v38 = vadd.f32 %v1132_v37, %v1131_v36 }
 0x2ea   : > { %v1134_v40 = vrot.slane %v1133_v38, 2 }
 0x2ec   : > { %v1135_v41 = vadd.f32 %v1134_v40, %v1133_v38 }
 0x2ee   : > { %v1136_v39 = vrot.slane %v1135_v41, 1 }
 0x2f0   : > { %v1137_v42 = vadd.f32 %v1136_v39, %v1135_v41 }
 0x2f2   : > { %v1139_v43 = vmul.f32 0.015625, %v1137_v42 }
 0x2f4   : > { %1480 = vmatmul.mubr.msk.f32.vlgmr.msra.gmra.mrb[12].mxu0 %vm298_vm0, %v1139_v43 }
 0x2f5   : > { %1483 = vmatpush3.msra.mxu0 %v1218_v44  ;;  %1484 = vmatprep.mubr.msk.f32.mxu0 %vm1657_vm10, %v1648_v14 }
 0x3c7   : > { %v1213_v45 = vpop.f32.mrb[12].mxu0 }
 0x3c8   : > { %v1217_v46 = vmax.f32 %v1213_v45, 0.0  ;;  %v1481_v47 = vpop.f32.mrb[13].mxu0 }
 0x3ca   : > { %1485 = vmatmul.mubr.msk.f32.vlgmr.msra.gmra.mrb[14].mxu0 %vm1219_vm11, %v1217_v46 }
 0x49d   : > { %v1289_v48 = vpop.f32.mrb[14].mxu0 }
 0x49e   : > { %v1427_v50 = vmul.f32 -1.442695, %v1289_v48  ;;  %v1486_v51 = vpop.f32.mrb[15].mxu0 }
 0x4a0   : > { %1628 = vpow2.f32 %v1427_v50 }
 0x4aa   : > { %v1629_v52 = vpop.eup %1628 }
 0x4ab   : > { %v1296_v53 = vadd.f32 1.0, %v1629_v52 }
 0x4ad   : > { %1630 = vrcp.f32 %v1296_v53 }
 0x4b7   : > { %v1631_v14 = vpop.eup %1630 }
 0x4b8   : > { %v1302_v57 = vrot.slane %v1631_v14, %v1301_v56 }
 0x4ba   : > { %v1303_v58 = vmul.f32 %v1302_v57, %v1109_v8  ;;  %v1304_v59 = vmul.f32 %v1302_v57, %v1110_v6  ;;  %v1305_v60 = vmul.f32 %v1302_v57, %v1111_v16  ;;  %v1306_v61 = vmul.f32 %v1302_v57, %v1112_v17  ;;  %v1634_v6 = vld [vmem:[%s1726_s14 + $0x10] sm:$0xff]  ;;  %v1635_v8 = vld [vmem:[%s1726_s14 + $0x18] sm:$0xff] }
 0x4bb   : > { %v1307_v62 = vmul.f32 %v1302_v57, %v1113_v20  ;;  %v1308_v63 = vmul.f32 %v1302_v57, %v1114_v49  ;;  %v1309_v0 = vmul.f32 %v1302_v57, %v1115_v26  ;;  %v1310_v1 = vmul.f32 %v1302_v57, %v1116_v33  ;;  %v1639_v17 = vld [vmem:[%s1726_s14 + $0x38] sm:$0xff] }
 0x4bc   : > { %v1311_v3 = vadd.f32 %v1632_v2, %v1303_v58  ;;  %v1312_v5 = vadd.f32 %v1633_v4, %v1304_v59  ;;  %v1313_v7 = vadd.f32 %v1634_v6, %v1305_v60  ;;  %v1314_v9 = vadd.f32 %v1635_v8, %v1306_v61 }
 0x4bd   : > { %v1315_v11 = vadd.f32 %v1636_v10, %v1307_v62  ;;  %v1316_v13 = vadd.f32 %v1637_v12, %v1308_v63  ;;  %v1317_v16 = vadd.f32 %v1638_v15, %v1309_v0  ;;  %v1318_v18 = vadd.f32 %v1639_v17, %v1310_v1 }
 0x4be   : > { %1319 = vst.msk [vmem:[%s278_s22] sm:$0xff] %vm298_vm0, %v1311_v3  ;;  %1320 = vst.msk [vmem:[%s278_s22 + $0x8] sm:$0xff] %vm298_vm0, %v1312_v5 }
 0x4bf   : > { %1321 = vst.msk [vmem:[%s278_s22 + $0x10] sm:$0xff] %vm298_vm0, %v1313_v7  ;;  %1322 = vst.msk [vmem:[%s278_s22 + $0x18] sm:$0xff] %vm298_vm0, %v1314_v9 }
 0x4c0   : > { %1323 = vst.msk [vmem:[%s278_s22 + $0x20] sm:$0xff] %vm298_vm0, %v1315_v11  ;;  %1324 = vst.msk [vmem:[%s278_s22 + $0x28] sm:$0xff] %vm298_vm0, %v1316_v13 }
 0x4c1   : > { %1325 = vst.msk [vmem:[%s278_s22 + $0x30] sm:$0xff] %vm298_vm0, %v1317_v16  ;;  %1326 = vst.msk [vmem:[%s278_s22 + $0x38] sm:$0xff] %vm298_vm0, %v1318_v18 }
 0x4c2 PF: > { %s17_s24 = sadd.s32 1, %s1646_s24  }
 0x4c3   : > { %p14_p4 = scmp.ge.s32.totalorder %s17_s24, 4  }
 0x4c5   :  { %16 = sbr.rel (!%p14_p4) target bundleno = 1 (0x1), region = 80 }

</bundles_post_ra>
